<compile_context>
chip_gen: v6e
topology: v6e:2x2x1
jax: 0.10.0
libtpu: 0.0.40
codegen_flags: <defaults>
</compile_context>

<pallas_src>
import functools

import jax
import jax.numpy as jnp
from jax import lax
from jax.experimental import pallas as pl
from jax.experimental.pallas import tpu as pltpu


def _round_up(x, m):
    return (x + m - 1) // m * m


def _chamfer_min_kernel(x_ref, y_ref, o_ref, *, lj, unroll):
    """One (batch, xyz1-tile) grid step.

    x_ref: (TI, 3)      xyz1 tile, point-major (points on sublanes).
    y_ref: (3, M_pad)   all xyz2 points of this batch, coordinate-major
                        (each coordinate is a lane-dense row).
    o_ref: (TI, 1)      sqrt(min_j ||x_i - y_j||^2).
    """
    ti = x_ref.shape[0]
    m_pad = y_ref.shape[1]
    n_chunks = m_pad // lj

    # Hoisted lane-broadcasts of the xyz1 coordinates (loop-invariant):
    # (TI, 1) column -> (TI, LJ) tile, done once per grid step.
    xb0 = jnp.broadcast_to(x_ref[:, 0:1], (ti, lj))
    xb1 = jnp.broadcast_to(x_ref[:, 1:2], (ti, lj))
    xb2 = jnp.broadcast_to(x_ref[:, 2:3], (ti, lj))

    def body(k, run_min):
        j0 = pl.multiple_of(k * lj, lj)
        # Lane-dense coordinate rows of this xyz2 chunk; the (1, LJ)->(TI, LJ)
        # sublane broadcast inside the subtraction needs no lane movement.
        y0 = y_ref[0:1, pl.ds(j0, lj)]
        y1 = y_ref[1:2, pl.ds(j0, lj)]
        y2 = y_ref[2:3, pl.ds(j0, lj)]
        d0 = xb0 - y0
        d1 = xb1 - y1
        d2 = xb2 - y2
        d = d0 * d0 + d1 * d1 + d2 * d2          # exact squared L2 (pure VPU)
        return jnp.minimum(run_min, d)           # elementwise running min

    init = jnp.full((ti, lj), jnp.inf, dtype=jnp.float32)
    run_min = lax.fori_loop(0, n_chunks, body, init, unroll=unroll)

    # Single cross-lane reduce per grid step, then sqrt.
    o_ref[...] = jnp.sqrt(jnp.min(run_min, axis=1, keepdims=True))


def chamfer_distance_l1_pm(xyz1, xyz2, *, ti=256, lj=128, unroll=4,
                           ignore_zeros=False):
    """xyz1: (B, N, 3), xyz2: (B, M, 3) -> scalar f32 = mean_i sqrt(min_j ||.||^2)."""
    xyz1 = jnp.asarray(xyz1, jnp.float32)
    xyz2 = jnp.asarray(xyz2, jnp.float32)
    B, N, _ = xyz1.shape
    _, M, _ = xyz2.shape

    # torch module semantics: ignore_zeros is only active for batch_size == 1.
    w1 = None
    if ignore_zeros and B == 1:
        nz1 = jnp.sum(xyz1, axis=2) != 0                     # (1, N)
        nz2 = jnp.sum(xyz2, axis=2) != 0                     # (1, M)
        # Excluded xyz2 points must never be nearest neighbours: push them far
        # away (squares to ~3e36, still finite in f32) instead of re-shaping.
        xyz2 = jnp.where(nz2[..., None], xyz2, jnp.float32(1e18))
        w1 = nz1.astype(jnp.float32)                         # mean mask for xyz1

    # --- tile sizes ---------------------------------------------------------
    ti_eff = ti
    while ti_eff > 8 and ti_eff >= 2 * _round_up(N, 8):
        ti_eff //= 2                 # don't use a tile far larger than N
    if B == 1:
        while ti_eff > 8 and _round_up(N, ti_eff) // ti_eff < 2:
            ti_eff //= 2             # keep >= 2 grid steps for v7x megacore
    n_pad = _round_up(N, ti_eff)
    m_pad = _round_up(M, lj)
    unroll_eff = max(1, min(unroll, m_pad // lj))

    # --- layouts ------------------------------------------------------------
    # xyz1: point-major, padded by replicating the last point (padding is
    # sliced out of the mean later, so its value never matters).
    xyz1_p = jnp.pad(xyz1, ((0, 0), (0, n_pad - N), (0, 0)), mode="edge")
    # xyz2: padded by replicating the last point (duplicates never change the
    # min -> no sentinel needed), then coordinate-major (B, 3, m_pad) so the
    # VMEM block is lane-dense (~32 B/point instead of ~512 B/point).
    xyz2_p = jnp.pad(xyz2, ((0, 0), (0, m_pad - M), (0, 0)), mode="edge")
    xyz2_t = jnp.transpose(xyz2_p, (0, 2, 1))

    # --- VMEM budget ---------------------------------------------------------
    xyz1_blk = ti_eff * 128 * 4          # (TI, 3): lanes pad 3 -> 128
    xyz2_blk = 8 * m_pad * 4             # (3, M_pad): sublanes pad 3 -> 8
    out_blk = ti_eff * 128 * 4           # (TI, 1): lanes pad 1 -> 128
    inner = 4 * ti_eff * lj * 4          # run_min + 3 hoisted x broadcasts
    need = 2 * (xyz1_blk + xyz2_blk + out_blk) + inner + (4 << 20)
    vmem_limit = int(min(max(32 << 20, need), 48 << 20))
    # TODO(synk): for M beyond ~700K points (xyz2 block > ~24 MiB double
    # buffered) add a third "arbitrary" grid axis over xyz2 with a VMEM
    # running-min scratch instead of keeping the whole xyz2[b] resident.

    grid = (B, n_pad // ti_eff)

    dist_sqrt = pl.pallas_call(
        functools.partial(_chamfer_min_kernel, lj=lj, unroll=unroll_eff),
        out_shape=jax.ShapeDtypeStruct((B, n_pad, 1), jnp.float32),
        grid_spec=pltpu.PrefetchScalarGridSpec(
            num_scalar_prefetch=0,
            grid=grid,
            in_specs=[
                # xyz1 tile, point-major; batch dim squeezed.
                pl.BlockSpec((None, ti_eff, 3), lambda b, i: (b, i, 0)),
                # xyz2, coordinate-major, whole (3, m_pad) block per step
                # (re-fetched only when the batch index changes).
                pl.BlockSpec((None, 3, m_pad), lambda b, i: (b, 0, 0)),
            ],
            out_specs=pl.BlockSpec((None, ti_eff, 1), lambda b, i: (b, i, 0)),
        ),
        compiler_params=pltpu.CompilerParams(
            dimension_semantics=("parallel", "parallel"),
            vmem_limit_bytes=vmem_limit,
        ),
    )(xyz1_p, xyz2_t)

    d = dist_sqrt[:, :N, 0]                                  # drop xyz1 padding
    if w1 is not None:
        return jnp.sum(d * w1) / jnp.maximum(jnp.sum(w1), 1.0)
    return jnp.mean(d)


def _reference(xyz1, xyz2, ignore_zeros=False):
    # pure-JAX reference for sanity checking (runs eagerly, small shapes only)
    xyz1 = jnp.asarray(xyz1, jnp.float32)
    xyz2 = jnp.asarray(xyz2, jnp.float32)
    if ignore_zeros and xyz1.shape[0] == 1:
        xyz1 = xyz1[:, jnp.sum(xyz1[0], axis=1) != 0]
        xyz2 = xyz2[:, jnp.sum(xyz2[0], axis=1) != 0]
    d = jnp.sum((xyz1[:, :, None, :] - xyz2[:, None, :, :]) ** 2, axis=-1)
    return jnp.mean(jnp.sqrt(jnp.min(d, axis=-1)))


if __name__ == "__main__":
    key = jax.random.PRNGKey(0)
    k1, k2 = jax.random.split(key)
    # Deliberately non-tile-aligned small shapes to exercise the padding paths.
    B, N, M = 2, 200, 100
    xyz1 = jax.random.normal(k1, (B, N, 3), dtype=jnp.float32)
    xyz2 = jax.random.normal(k2, (B, M, 3), dtype=jnp.float32)

    out = jax.block_until_ready(chamfer_distance_l1_pm(xyz1, xyz2))
    ref = jax.block_until_ready(_reference(xyz1, xyz2))
    assert jnp.allclose(out, ref, rtol=1e-4, atol=1e-5), (out, ref)

    # ignore_zeros path (the torch module only applies it for batch_size == 1).
    xyz1b = xyz1[:1, :64].at[0, :5].set(0.0)
    xyz2b = xyz2[:1, :48].at[0, :3].set(0.0)
    out_z = jax.block_until_ready(
        chamfer_distance_l1_pm(xyz1b, xyz2b, ignore_zeros=True))
    ref_z = jax.block_until_ready(_reference(xyz1b, xyz2b, ignore_zeros=True))
    assert jnp.allclose(out_z, ref_z, rtol=1e-4, atol=1e-5), (out_z, ref_z)

    print("KERNEL_OK")
</pallas_src>

<mosaic_0001>
module attributes {stable_mosaic.version = 11 : i64} {
  func.func @_chamfer_min_kernel(%arg0: i32, %arg1: i32, %arg2: memref<1x256x3xf32, #tpu.memory_space<vmem>>, %arg3: memref<1x3x128xf32, #tpu.memory_space<vmem>>, %arg4: memref<1x256x1xf32, #tpu.memory_space<vmem>>) attributes {dimension_semantics = [#tpu.dimension_semantics<parallel>, #tpu.dimension_semantics<parallel>], iteration_bounds = array<i64: 2, 1>, scalar_prefetch = 0 : i64, scratch_operands = 0 : i64, tpu.core_type = #tpu.core_type<tc>, window_params = [{transform_indices = @transform_0, window_bounds = array<i64: 1, 256, 3>}, {transform_indices = @transform_1, window_bounds = array<i64: 1, 3, 128>}, {transform_indices = @transform_2, window_bounds = array<i64: 1, 256, 1>}]} {
    %c0 = arith.constant 0 : index
    %c0_0 = arith.constant 0 : index
    %c0_1 = arith.constant 0 : index
    %0 = vector.load %arg2[%c0, %c0_0, %c0_1] : memref<1x256x3xf32, #tpu.memory_space<vmem>>, vector<1x256x1xf32>
    %1 = vector.shape_cast %0 : vector<1x256x1xf32> to vector<256x1xf32>
    %2 = vector.shape_cast %1 : vector<256x1xf32> to vector<256x1xf32>
    %3 = vector.broadcast %2 : vector<256x1xf32> to vector<256x128xf32>
    %c0_2 = arith.constant 0 : index
    %c0_3 = arith.constant 0 : index
    %c1 = arith.constant 1 : index
    %4 = vector.load %arg2[%c0_2, %c0_3, %c1] : memref<1x256x3xf32, #tpu.memory_space<vmem>>, vector<1x256x1xf32>
    %5 = vector.shape_cast %4 : vector<1x256x1xf32> to vector<256x1xf32>
    %6 = vector.shape_cast %5 : vector<256x1xf32> to vector<256x1xf32>
    %7 = vector.broadcast %6 : vector<256x1xf32> to vector<256x128xf32>
    %c0_4 = arith.constant 0 : index
    %c0_5 = arith.constant 0 : index
    %c2 = arith.constant 2 : index
    %8 = vector.load %arg2[%c0_4, %c0_5, %c2] : memref<1x256x3xf32, #tpu.memory_space<vmem>>, vector<1x256x1xf32>
    %9 = vector.shape_cast %8 : vector<1x256x1xf32> to vector<256x1xf32>
    %10 = vector.shape_cast %9 : vector<256x1xf32> to vector<256x1xf32>
    %11 = vector.broadcast %10 : vector<256x1xf32> to vector<256x128xf32>
    %cst = arith.constant 0x7F800000 : f32
    %12 = vector.broadcast %cst : f32 to vector<256x128xf32>
    %c0_i32 = arith.constant 0 : i32
    %c128_i32 = arith.constant 128 : i32
    %13 = arith.muli %c0_i32, %c128_i32 : i32
    %14 = tpu.assume_multiple %13, 128 : i32
    %c0_6 = arith.constant 0 : index
    %c0_7 = arith.constant 0 : index
    %15 = arith.index_cast %14 : i32 to index
    %16 = vector.load %arg3[%c0_6, %c0_7, %15] : memref<1x3x128xf32, #tpu.memory_space<vmem>>, vector<1x1x128xf32>
    %17 = vector.shape_cast %16 : vector<1x1x128xf32> to vector<1x128xf32>
    %c0_8 = arith.constant 0 : index
    %c1_9 = arith.constant 1 : index
    %18 = arith.index_cast %14 : i32 to index
    %19 = vector.load %arg3[%c0_8, %c1_9, %18] : memref<1x3x128xf32, #tpu.memory_space<vmem>>, vector<1x1x128xf32>
    %20 = vector.shape_cast %19 : vector<1x1x128xf32> to vector<1x128xf32>
    %c0_10 = arith.constant 0 : index
    %c2_11 = arith.constant 2 : index
    %21 = arith.index_cast %14 : i32 to index
    %22 = vector.load %arg3[%c0_10, %c2_11, %21] : memref<1x3x128xf32, #tpu.memory_space<vmem>>, vector<1x1x128xf32>
    %23 = vector.shape_cast %22 : vector<1x1x128xf32> to vector<1x128xf32>
    %24 = vector.broadcast %17 : vector<1x128xf32> to vector<256x128xf32>
    %25 = arith.subf %3, %24 : vector<256x128xf32>
    %26 = vector.broadcast %20 : vector<1x128xf32> to vector<256x128xf32>
    %27 = arith.subf %7, %26 : vector<256x128xf32>
    %28 = vector.broadcast %23 : vector<1x128xf32> to vector<256x128xf32>
    %29 = arith.subf %11, %28 : vector<256x128xf32>
    %30 = arith.mulf %25, %25 : vector<256x128xf32>
    %31 = arith.mulf %27, %27 : vector<256x128xf32>
    %32 = arith.addf %30, %31 : vector<256x128xf32>
    %33 = arith.mulf %29, %29 : vector<256x128xf32>
    %34 = arith.addf %32, %33 : vector<256x128xf32>
    %35 = arith.minimumf %12, %34 : vector<256x128xf32>
    %c1_i32 = arith.constant 1 : i32
    %cst_12 = arith.constant dense<0x7F800000> : vector<256xf32>
    %36 = vector.multi_reduction <minimumf>, %35, %cst_12 [1] : vector<256x128xf32> to vector<256xf32>
    %37 = vector.shape_cast %36 : vector<256xf32> to vector<256x1xf32>
    %38 = math.sqrt %37 : vector<256x1xf32>
    %c0_13 = arith.constant 0 : index
    %c0_14 = arith.constant 0 : index
    %c0_15 = arith.constant 0 : index
    %39 = vector.load %arg4[%c0_13, %c0_14, %c0_15] : memref<1x256x1xf32, #tpu.memory_space<vmem>>, vector<1x256x1xf32>
    %40 = vector.shape_cast %39 : vector<1x256x1xf32> to vector<256x1xf32>
    %41 = vector.shape_cast %38 : vector<256x1xf32> to vector<1x256x1xf32>
    tpu.vector_store %arg4[%c0_13, %c0_14, %c0_15], %41 {strides = array<i32>} : memref<1x256x1xf32, #tpu.memory_space<vmem>>, vector<1x256x1xf32>,
    return
  }
  func.func @transform_0(%arg0: i32, %arg1: i32) -> (i32, i32, i32) {
    %c0_i32 = arith.constant 0 : i32
    %c0_i32_0 = arith.constant 0 : i32
    return %arg0, %arg1, %c0_i32 : i32, i32, i32
  }
  func.func @transform_1(%arg0: i32, %arg1: i32) -> (i32, i32, i32) {
    %c0_i32 = arith.constant 0 : i32
    %c0_i32_0 = arith.constant 0 : i32
    %c0_i32_1 = arith.constant 0 : i32
    return %arg0, %c0_i32, %c0_i32_0 : i32, i32, i32
  }
  func.func @transform_2(%arg0: i32, %arg1: i32) -> (i32, i32, i32) {
    %c0_i32 = arith.constant 0 : i32
    %c0_i32_0 = arith.constant 0 : i32
    return %arg0, %arg1, %c0_i32 : i32, i32, i32
  }
}

</mosaic_0001>

<bundles_post_ra>
// kernel: tpu_custom_call.1
= control target key start
LH: loop header
LB: loop body
LE: loop exit
PB: predicated region body
PF: predicated region fallthrough
CT: control target
= control target key end

     0   :  { %s1495_s9 = smov 0   ;;  %s1497_s10 = smov 0   ;;  %s2316_s0 = inlined_call_operand.vmem [shape: f32[2,256,3], index: 0, kind: input, shape index: {}]   ;;  %s2317_s1 = inlined_call_operand.vmem [shape: f32[2,3,128], index: 1, kind: input, shape index: {}]   ;;  %s2318_s2 = inlined_call_operand.vmem [shape: f32[2,256,1], index: 2, kind: output, shape index: {}]  }
   0x1   :  { %s1499_s11 = smov 0  }
   0x2 LB: > { %s24_s12 = sadd.s32 1, %s1471_s10  ;;  %p1343_p0 = scmp.ge.s32.totalorder %s1475_s11, 1  ;;  %s1475_s11 = sphi %s1499_s11, %s12_s11   ;;  %s1471_s10 = sphi %s1497_s10, %s2328_s10   ;;  %s1467_s9 = sphi %s1495_s9, %s2327_s9  }
   0x3   : > { %p26_p1 = scmp.ge.s32.totalorder %s24_s12, 2  ;;  %p142_p2 = scmp.lt.s32.totalorder %s1475_s11, 3 }
   0x5   : > { %s2330_s12 = smov (%p26_p1, %s24_s12), 0  ;;  %p143_p3 = pnand %p1343_p0, %p142_p2 }
   0x7   : > { %146 = sbr.rel (%p143_p3) target bundleno = 499 (0x1f3), region = 28 }
   0xc   : > { %p177_p4 = scmp.lt.s32.totalorder %s1467_s9, 1  ;;  %v1477_v0 = vmov 0   ;;  %v1478_v33 = vmov 1   ;;  %v1479_v38 = vmov 2   ;;  %vm1207_vm0 = vcmask 7168  }
   0xd   : > { %1384 = vset.pattern.permute.xlu1 %v1477_v0  ;;  %1383 = vset.pattern.permute.xlu0 %v1477_v0 }
   0xe   : > { %s2332_s9 = smov (!%p177_p4, %s1467_s9), 1 }
   0xf   : > { %s1354_s13 = sshll.u32 %s2332_s9, 8  ;;  %s1346_s17 = sshll.u32 %s2332_s9, 2 }
  0x10   : > { %s1521_s16 = scalar_lea.vmem %s2316_s0, %s1354_s13  ;;  %s1773_s20 = scalar_lea.vmem %s2317_s1, %s1346_s17 }
  0x11   : > { %v1524_v1 = vld [vmem:[%s1521_s16 + $0x10] sm:$0xff]  ;;  %v1527_v2 = vld [vmem:[%s1521_s16] sm:$0xff]  ;;  %v1532_v3 = vld [vmem:[%s1521_s16 + $0x18] sm:$0xff]  ;;  %s2037_s23 = scalar_lea.vmem %s2318_s2, %s1354_s13 }
  0x12   : > { %244 = vperm.xlu1 %1384, %v1524_v1   ;;  %234 = vperm.xlu0 %1383, %v1527_v2   ;;  %v1535_v4 = vld [vmem:[%s1521_s16 + $0x8] sm:$0xff]  ;;  %v1543_v6 = vld [vmem:[%s1521_s16 + $0x20] sm:$0xff]  ;;  %v1548_v7 = vld [vmem:[%s1521_s16 + $0x38] sm:$0xff] }
  0x13   : > { %v1540_v5 = vld [vmem:[%s1521_s16 + $0x28] sm:$0xff]  ;;  %v1551_v8 = vld [vmem:[%s1521_s16 + $0x30] sm:$0xff]  ;;  %v1559_v10 = vld [vmem:[%s1521_s16 + $0x40] sm:$0xff] }
  0x14   : > { %v1556_v9 = vld [vmem:[%s1521_s16 + $0x48] sm:$0xff]  ;;  %v1564_v11 = vld [vmem:[%s1521_s16 + $0x58] sm:$0xff]  ;;  %v1567_v12 = vld [vmem:[%s1521_s16 + $0x50] sm:$0xff] }
  0x15   : > { %v1572_v13 = vld [vmem:[%s1521_s16 + $0x68] sm:$0xff]  ;;  %v1575_v14 = vld [vmem:[%s1521_s16 + $0x60] sm:$0xff]  ;;  %v1580_v15 = vld [vmem:[%s1521_s16 + $0x78] sm:$0xff] }
  0x16   : > { %249 = vperm.xlu1 %1384, %v1532_v3   ;;  %239 = vperm.xlu0 %1383, %v1535_v4   ;;  %v1583_v16 = vld [vmem:[%s1521_s16 + $0x70] sm:$0xff]  ;;  %v1588_v17 = vld [vmem:[%s1521_s16 + $0x88] sm:$0xff]  ;;  %v1591_v18 = vld [vmem:[%s1521_s16 + $0x80] sm:$0xff] }
  0x17   : > { %v1596_v19 = vld [vmem:[%s1521_s16 + $0x98] sm:$0xff]  ;;  %v1599_v20 = vld [vmem:[%s1521_s16 + $0x90] sm:$0xff]  ;;  %v1604_v21 = vld [vmem:[%s1521_s16 + $0xa8] sm:$0xff] }
  0x18   : > { %v1607_v22 = vld [vmem:[%s1521_s16 + $0xa0] sm:$0xff]  ;;  %v1612_v23 = vld [vmem:[%s1521_s16 + $0xb8] sm:$0xff]  ;;  %v1615_v24 = vld [vmem:[%s1521_s16 + $0xb0] sm:$0xff] }
  0x19   : > { %v1620_v25 = vld [vmem:[%s1521_s16 + $0xc8] sm:$0xff]  ;;  %v1623_v26 = vld [vmem:[%s1521_s16 + $0xc0] sm:$0xff]  ;;  %v1628_v27 = vld [vmem:[%s1521_s16 + $0xd8] sm:$0xff] }
  0x1a   : > { %259 = vperm.xlu1 %1384, %v1540_v5   ;;  %254 = vperm.xlu0 %1383, %v1543_v6   ;;  %v1631_v28 = vld [vmem:[%s1521_s16 + $0xd0] sm:$0xff]  ;;  %v1636_v29 = vld [vmem:[%s1521_s16 + $0xe8] sm:$0xff]  ;;  %v1639_v30 = vld [vmem:[%s1521_s16 + $0xe0] sm:$0xff] }
  0x1b   : > { %v1644_v31 = vld [vmem:[%s1521_s16 + $0xf8] sm:$0xff]  ;;  %v1647_v32 = vld [vmem:[%s1521_s16 + $0xf0] sm:$0xff] }
  0x1e   : > { %269 = vperm.xlu1 %1384, %v1548_v7   ;;  %264 = vperm.xlu0 %1383, %v1551_v8  }
  0x22   : > { %279 = vperm.xlu1 %1384, %v1556_v9   ;;  %274 = vperm.xlu0 %1383, %v1559_v10  }
  0x26   : > { %289 = vperm.xlu1 %1384, %v1564_v11   ;;  %284 = vperm.xlu0 %1383, %v1567_v12  }
  0x2a   : > { %299 = vperm.xlu1 %1384, %v1572_v13   ;;  %294 = vperm.xlu0 %1383, %v1575_v14  }
  0x2e   : > { %309 = vperm.xlu1 %1384, %v1580_v15   ;;  %304 = vperm.xlu0 %1383, %v1583_v16  }
  0x32   : > { %319 = vperm.xlu1 %1384, %v1588_v17   ;;  %314 = vperm.xlu0 %1383, %v1591_v18  }
  0x36   : > { %329 = vperm.xlu1 %1384, %v1596_v19   ;;  %324 = vperm.xlu0 %1383, %v1599_v20  }
  0x3a   : > { %339 = vperm.xlu1 %1384, %v1604_v21   ;;  %334 = vperm.xlu0 %1383, %v1607_v22  }
  0x3e   : > { %349 = vperm.xlu1 %1384, %v1612_v23   ;;  %344 = vperm.xlu0 %1383, %v1615_v24  }
  0x42   : > { %359 = vperm.xlu1 %1384, %v1620_v25   ;;  %354 = vperm.xlu0 %1383, %v1623_v26  }
  0x46   : > { %369 = vperm.xlu1 %1384, %v1628_v27   ;;  %364 = vperm.xlu0 %1383, %v1631_v28  }
  0x4a   : > { %379 = vperm.xlu1 %1384, %v1636_v29   ;;  %374 = vperm.xlu0 %1383, %v1639_v30  }
  0x4e   : > { %389 = vperm.xlu1 %1384, %v1644_v31   ;;  %384 = vperm.xlu0 %1383, %v1647_v32  }
  0x52   : > { %1386 = vset.pattern.permute.xlu1 %v1478_v33  ;;  %1385 = vset.pattern.permute.xlu0 %v1478_v33 }
  0x53   : > { %397 = vperm.xlu1 %1386, %v1535_v4   ;;  %393 = vperm.xlu0 %1385, %v1527_v2  }
  0x57   : > { %401 = vperm.xlu1 %1386, %v1524_v1   ;;  %405 = vperm.xlu0 %1385, %v1532_v3  }
  0x5b   : > { %409 = vperm.xlu1 %1386, %v1543_v6   ;;  %413 = vperm.xlu0 %1385, %v1540_v5  }
  0x5f   : > { %417 = vperm.xlu1 %1386, %v1551_v8   ;;  %421 = vperm.xlu0 %1385, %v1548_v7  }
  0x63   : > { %425 = vperm.xlu1 %1386, %v1559_v10   ;;  %429 = vperm.xlu0 %1385, %v1556_v9  }
  0x67   : > { %433 = vperm.xlu1 %1386, %v1567_v12   ;;  %437 = vperm.xlu0 %1385, %v1564_v11  }
  0x6b   : > { %441 = vperm.xlu1 %1386, %v1575_v14   ;;  %445 = vperm.xlu0 %1385, %v1572_v13  }
  0x6f   : > { %449 = vperm.xlu1 %1386, %v1583_v16   ;;  %453 = vperm.xlu0 %1385, %v1580_v15  }
  0x73   : > { %457 = vperm.xlu1 %1386, %v1591_v18   ;;  %461 = vperm.xlu0 %1385, %v1588_v17  }
  0x77   : > { %465 = vperm.xlu1 %1386, %v1599_v20   ;;  %469 = vperm.xlu0 %1385, %v1596_v19  }
  0x7b   : > { %473 = vperm.xlu1 %1386, %v1607_v22   ;;  %477 = vperm.xlu0 %1385, %v1604_v21  }
  0x7f   : > { %481 = vperm.xlu1 %1386, %v1615_v24   ;;  %485 = vperm.xlu0 %1385, %v1612_v23  }
  0x83   : > { %489 = vperm.xlu1 %1386, %v1623_v26   ;;  %493 = vperm.xlu0 %1385, %v1620_v25  }
  0x87   : > { %497 = vperm.xlu1 %1386, %v1631_v28   ;;  %501 = vperm.xlu0 %1385, %v1628_v27  }
  0x8b   : > { %505 = vperm.xlu1 %1386, %v1639_v30   ;;  %509 = vperm.xlu0 %1385, %v1636_v29  }
  0x8d   : > { %v1681_v34 = vpop.permute.xlu1 %244  ;;  %v1683_v35 = vpop.permute.xlu0 %234 }
  0x8f   : > { %513 = vperm.xlu1 %1386, %v1647_v32   ;;  %517 = vperm.xlu0 %1385, %v1644_v31  }
  0x91   : > { %v1687_v36 = vpop.permute.xlu1 %249  ;;  %v1689_v37 = vpop.permute.xlu0 %239 }
  0x93   : > { %1387 = vset.pattern.permute.xlu1 %v1479_v38  ;;  %1388 = vset.pattern.permute.xlu0 %v1479_v38 }
  0x94   : > { %521 = vperm.xlu1 %1387, %v1527_v2   ;;  %525 = vperm.xlu0 %1388, %v1535_v4  }
  0x95   : > { %v1693_v39 = vpop.permute.xlu1 %259  ;;  %v1695_v40 = vpop.permute.xlu0 %254 }
  0x98   : > { %529 = vperm.xlu1 %1387, %v1524_v1   ;;  %537 = vperm.xlu0 %1388, %v1543_v6   ;;  %v1778_v1 = vld [vmem:[%s1773_s20] ss:$0 sm:$0xff] }
  0x99   : > { %v1699_v41 = vpop.permute.xlu1 %269  ;;  %v1701_v42 = vpop.permute.xlu0 %264 }
  0x9c   : > { %533 = vperm.xlu1 %1387, %v1532_v3   ;;  %545 = vperm.xlu0 %1388, %v1551_v8   ;;  %v658_v8 = vsub.f32 %v1687_v36, %v1778_v1 }
  0x9d   : > { %v1705_v43 = vpop.permute.xlu1 %279  ;;  %v1707_v44 = vpop.permute.xlu0 %274 }
  0xa0   : > { %541 = vperm.xlu1 %1387, %v1540_v5   ;;  %553 = vperm.xlu0 %1388, %v1559_v10  }
  0xa1   : > { %v1711_v45 = vpop.permute.xlu1 %289  ;;  %v1713_v46 = vpop.permute.xlu0 %284 }
  0xa2   : > { %v666_v38 = vsub.f32 %v1711_v45, %v1778_v1 }
  0xa4   : > { %549 = vperm.xlu1 %1387, %v1548_v7   ;;  %561 = vperm.xlu0 %1388, %v1567_v12  }
  0xa5   : > { %v1717_v47 = vpop.permute.xlu1 %299  ;;  %v1719_v48 = vpop.permute.xlu0 %294 }
  0xa8   : > { %557 = vperm.xlu1 %1387, %v1556_v9   ;;  %569 = vperm.xlu0 %1388, %v1575_v14   ;;  %v1796_v9 = vld [vmem:[%s1773_s20 + $0x1] ss:$0 sm:$0xff]  ;;  %v660_v14 = vsub.f32 %v1693_v39, %v1778_v1 }
  0xa9   : > { %v1723_v49 = vpop.permute.xlu1 %309  ;;  %v1725_v50 = vpop.permute.xlu0 %304 }
  0xac   : > { %565 = vperm.xlu1 %1387, %v1564_v11   ;;  %577 = vperm.xlu0 %1388, %v1583_v16  }
  0xad   : > { %v1729_v51 = vpop.permute.xlu1 %319  ;;  %v1731_v52 = vpop.permute.xlu0 %314 }
  0xb0   : > { %573 = vperm.xlu1 %1387, %v1572_v13   ;;  %585 = vperm.xlu0 %1388, %v1591_v18   ;;  %v762_v13 = vmul.f32 %v658_v8, %v658_v8  ;;  %v770_v8 = vmul.f32 %v666_v38, %v666_v38 }
  0xb1   : > { %v1735_v53 = vpop.permute.xlu1 %329  ;;  %v1737_v54 = vpop.permute.xlu0 %324 }
  0xb2   : > { %v674_v38 = vsub.f32 %v1735_v53, %v1778_v1 }
  0xb4   : > { %581 = vperm.xlu1 %1387, %v1580_v15   ;;  %593 = vperm.xlu0 %1388, %v1599_v20   ;;  %v764_v20 = vmul.f32 %v660_v14, %v660_v14 }
  0xb5   : > { %v1741_v55 = vpop.permute.xlu1 %339  ;;  %v1743_v56 = vpop.permute.xlu0 %334 }
  0xb8   : > { %589 = vperm.xlu1 %1387, %v1588_v17   ;;  %601 = vperm.xlu0 %1388, %v1607_v22  }
  0xb9   : > { %v1747_v57 = vpop.permute.xlu1 %349  ;;  %v1749_v58 = vpop.permute.xlu0 %344 }
  0xbc   : > { %597 = vperm.xlu1 %1387, %v1596_v19   ;;  %609 = vperm.xlu0 %1388, %v1615_v24  }
  0xbd   : > { %v1753_v59 = vpop.permute.xlu1 %359  ;;  %v1755_v60 = vpop.permute.xlu0 %354 }
  0xc0   : > { %605 = vperm.xlu1 %1387, %v1604_v21   ;;  %617 = vperm.xlu0 %1388, %v1623_v26   ;;  %v662_v21 = vsub.f32 %v1699_v41, %v1778_v1 }
  0xc1   : > { %v1759_v61 = vpop.permute.xlu1 %369  ;;  %v1761_v62 = vpop.permute.xlu0 %364 }
  0xc4   : > { %613 = vperm.xlu1 %1387, %v1612_v23   ;;  %625 = vperm.xlu0 %1388, %v1631_v28   ;;  %v664_v28 = vsub.f32 %v1705_v43, %v1778_v1 }
  0xc5   : > { %v1766_v63 = vpop.permute.xlu1 %379  ;;  %v1768_v0 = vpop.permute.xlu0 %374 }
  0xc6   : > { %v768_v36 = vmul.f32 %v664_v28, %v664_v28 }
  0xc8   : > { %621 = vperm.xlu1 %1387, %v1620_v25   ;;  %633 = vperm.xlu0 %1388, %v1639_v30  }
  0xc9   : > { %v390_v2 = vpop.permute.xlu1 %389  ;;  %v385_v3 = vpop.permute.xlu0 %384 }
  0xca   : > { %v1781_v4 = vsub.f32 %v390_v2, %v1778_v1  ;;  %v1784_v5 = vsub.f32 %v385_v3, %v1778_v1 }
  0xcc   : > { %629 = vperm.xlu1 %1387, %v1628_v27   ;;  %641 = vperm.xlu0 %1388, %v1647_v32   ;;  %v766_v27 = vmul.f32 %v662_v21, %v662_v21 }
  0xce   : > { %v1788_v6 = vpop.permute.xlu1 %397  ;;  %v1790_v7 = vpop.permute.xlu0 %393 }
  0xd0   : > { %637 = vperm.xlu1 %1387, %v1636_v29  }
  0xd2   : > { %v1798_v10 = vpop.permute.xlu1 %401  ;;  %v406_v11 = vpop.permute.xlu0 %405 }
  0xd3   : > { %v694_v12 = vsub.f32 %v406_v11, %v1796_v9  ;;  %v668_v11 = vsub.f32 %v1717_v47, %v1778_v1 }
  0xd4   : > { %645 = vperm.xlu1 %1387, %v1644_v31  }
  0xd5   : > { %v794_v15 = vmul.f32 %v694_v12, %v694_v12 }
  0xd6   : > { %v1804_v16 = vpop.permute.xlu1 %409  ;;  %v414_v17 = vpop.permute.xlu0 %413 }
  0xd7   : > { %v1806_v18 = vadd.f32 %v794_v15, %v762_v13  ;;  %v696_v19 = vsub.f32 %v414_v17, %v1796_v9  ;;  %v772_v17 = vmul.f32 %v668_v11, %v668_v11  ;;  %v778_v11 = vmul.f32 %v674_v38, %v674_v38 }
  0xd9   : > { %v796_v22 = vmul.f32 %v696_v19, %v696_v19  ;;  %v670_v19 = vsub.f32 %v1723_v49, %v1778_v1 }
  0xda   : > { %v1811_v23 = vpop.permute.xlu1 %417  ;;  %v422_v24 = vpop.permute.xlu0 %421 }
  0xdb   : > { %v1813_v25 = vadd.f32 %v796_v22, %v764_v20  ;;  %v698_v26 = vsub.f32 %v422_v24, %v1796_v9 }
  0xdd   : > { %v798_v29 = vmul.f32 %v698_v26, %v698_v26  ;;  %v774_v26 = vmul.f32 %v670_v19, %v670_v19 }
  0xde   : > { %v1818_v30 = vpop.permute.xlu1 %425  ;;  %v430_v31 = vpop.permute.xlu0 %429 }
  0xdf   : > { %v1820_v32 = vadd.f32 %v798_v29, %v766_v27  ;;  %v700_v33 = vsub.f32 %v430_v31, %v1796_v9  ;;  %v672_v27 = vsub.f32 %v1729_v51, %v1778_v1 }
  0xe1   : > { %v800_v39 = vmul.f32 %v700_v33, %v700_v33 }
  0xe2   : > { %v1825_v41 = vpop.permute.xlu1 %433  ;;  %v438_v2 = vpop.permute.xlu0 %437 }
  0xe3   : > { %v1827_v3 = vadd.f32 %v800_v39, %v768_v36  ;;  %v702_v43 = vsub.f32 %v438_v2, %v1796_v9  ;;  %v776_v36 = vmul.f32 %v672_v27, %v672_v27 }
  0xe5   : > { %v802_v12 = vmul.f32 %v702_v43, %v702_v43 }
  0xe6   : > { %v1832_v13 = vpop.permute.xlu1 %441  ;;  %v446_v14 = vpop.permute.xlu0 %445 }
  0xe7   : > { %v1834_v15 = vadd.f32 %v802_v12, %v770_v8  ;;  %v704_v45 = vsub.f32 %v446_v14, %v1796_v9  ;;  %v676_v12 = vsub.f32 %v1741_v55, %v1778_v1 }
  0xe9   : > { %v804_v20 = vmul.f32 %v704_v45, %v704_v45 }
  0xea   : > { %v1839_v21 = vpop.permute.xlu1 %449  ;;  %v454_v22 = vpop.permute.xlu0 %453 }
  0xeb   : > { %v1841_v24 = vadd.f32 %v804_v20, %v772_v17  ;;  %v706_v47 = vsub.f32 %v454_v22, %v1796_v9  ;;  %v780_v20 = vmul.f32 %v676_v12, %v676_v12  ;;  %v678_v22 = vsub.f32 %v1747_v57, %v1778_v1 }
  0xed   : > { %v806_v28 = vmul.f32 %v706_v47, %v706_v47 }
  0xee   : > { %v1846_v29 = vpop.permute.xlu1 %457  ;;  %v462_v31 = vpop.permute.xlu0 %461 }
  0xef   : > { %v1848_v33 = vadd.f32 %v806_v28, %v774_v26  ;;  %v708_v49 = vsub.f32 %v462_v31, %v1796_v9  ;;  %v782_v31 = vmul.f32 %v678_v22, %v678_v22  ;;  %v684_v22 = vsub.f32 %v1766_v63, %v1778_v1 }
  0xf0   : > { %v656_v63 = vsub.f32 %v1689_v37, %v1778_v1 }
  0xf1   : > { %v808_v39 = vmul.f32 %v708_v49, %v708_v49  ;;  %v680_v49 = vsub.f32 %v1753_v59, %v1778_v1 }
  0xf2   : > { %v1853_v2 = vpop.permute.xlu1 %465  ;;  %v470_v43 = vpop.permute.xlu0 %469 }
  0xf3   : > { %v1855_v8 = vadd.f32 %v808_v39, %v776_v36  ;;  %v710_v51 = vsub.f32 %v470_v43, %v1796_v9 }
  0xf5   : > { %v810_v14 = vmul.f32 %v710_v51, %v710_v51  ;;  %v784_v51 = vmul.f32 %v680_v49, %v680_v49  ;;  %v788_v49 = vmul.f32 %v684_v22, %v684_v22 }
  0xf6   : > { %v1860_v45 = vpop.permute.xlu1 %473  ;;  %v478_v17 = vpop.permute.xlu0 %477 }
  0xf7   : > { %v1862_v19 = vadd.f32 %v810_v14, %v778_v11  ;;  %v712_v53 = vsub.f32 %v478_v17, %v1796_v9  ;;  %v682_v11 = vsub.f32 %v1759_v61, %v1778_v1 }
  0xf9   : > { %v812_v47 = vmul.f32 %v712_v53, %v712_v53 }
  0xfa   : > { %v1867_v26 = vpop.permute.xlu1 %481  ;;  %v486_v27 = vpop.permute.xlu0 %485 }
  0xfb   : > { %v1869_v28 = vadd.f32 %v812_v47, %v780_v20  ;;  %v714_v55 = vsub.f32 %v486_v27, %v1796_v9  ;;  %v786_v20 = vmul.f32 %v682_v11, %v682_v11 }
  0xfd   : > { %v814_v36 = vmul.f32 %v714_v55, %v714_v55 }
  0xfe   : > { %v1874_v38 = vpop.permute.xlu1 %489  ;;  %v494_v39 = vpop.permute.xlu0 %493 }
  0xff   : > { %v1876_v43 = vadd.f32 %v814_v36, %v782_v31  ;;  %v716_v57 = vsub.f32 %v494_v39, %v1796_v9  ;;  %v692_v36 = vsub.f32 %v1788_v6, %v1796_v9  ;;  %v790_v6 = vmul.f32 %v1781_v4, %v1781_v4 }
 0x100   : > { %v659_v4 = vsub.f32 %v1695_v40, %v1778_v1 }
 0x101   : > { %v816_v12 = vmul.f32 %v716_v57, %v716_v57  ;;  %v691_v57 = vsub.f32 %v1790_v7, %v1796_v9  ;;  %v789_v7 = vmul.f32 %v1784_v5, %v1784_v5  ;;  %v792_v22 = vmul.f32 %v692_v36, %v692_v36 }
 0x102   : > { %v1881_v14 = vpop.permute.xlu1 %497  ;;  %v502_v17 = vpop.permute.xlu0 %501 }
 0x103   : > { %v1883_v53 = vadd.f32 %v816_v12, %v784_v51  ;;  %v718_v59 = vsub.f32 %v502_v17, %v1796_v9 }
 0x105   : > { %2319 = vst [vmem:[#allocation2_spill] sm:$0xff] %v1883_v53  ;;  %v818_v47 = vmul.f32 %v718_v59, %v718_v59 }
 0x106   : > { %v1888_v27 = vpop.permute.xlu1 %505  ;;  %v510_v55 = vpop.permute.xlu0 %509 }
 0x107   : > { %v1890_v31 = vadd.f32 %v818_v47, %v786_v20  ;;  %v720_v61 = vsub.f32 %v510_v55, %v1796_v9  ;;  %v655_v20 = vsub.f32 %v1683_v35, %v1778_v1  ;;  %v693_v47 = vsub.f32 %v1798_v10, %v1796_v9 }
 0x108   : > { %v695_v35 = vsub.f32 %v1804_v16, %v1796_v9  ;;  %v697_v16 = vsub.f32 %v1811_v23, %v1796_v9  ;;  %v699_v23 = vsub.f32 %v1818_v30, %v1796_v9  ;;  %v701_v30 = vsub.f32 %v1825_v41, %v1796_v9 }
 0x109   : > { %2320 = vst [vmem:[#allocation3_spill] sm:$0xff] %v1890_v31  ;;  %v820_v39 = vmul.f32 %v720_v61, %v720_v61  ;;  %v1912_v61 = vld [vmem:[%s1773_s20 + $0x2] ss:$0 sm:$0xff]  ;;  %v703_v41 = vsub.f32 %v1832_v13, %v1796_v9  ;;  %v705_v13 = vsub.f32 %v1839_v21, %v1796_v9 }
 0x10a   : > { %v514_v51 = vpop.permute.xlu1 %513  ;;  %v518_v11 = vpop.permute.xlu0 %517  ;;  %v795_v31 = vmul.f32 %v695_v35, %v695_v35 }
 0x10b   : > { %v1899_v12 = vadd.f32 %v820_v39, %v788_v49  ;;  %v721_v17 = vsub.f32 %v514_v51, %v1796_v9  ;;  %v722_v59 = vsub.f32 %v518_v11, %v1796_v9  ;;  %v657_v49 = vsub.f32 %v1681_v34, %v1778_v1 }
 0x10c   : > { %v791_v39 = vmul.f32 %v691_v57, %v691_v57  ;;  %v760_v51 = vmul.f32 %v656_v63, %v656_v63  ;;  %v793_v57 = vmul.f32 %v693_v47, %v693_v47  ;;  %v805_v21 = vmul.f32 %v705_v13, %v705_v13 }
 0x10d   : > { %2321 = vst [vmem:[#allocation4_spill] sm:$0xff] %v1899_v12  ;;  %v821_v37 = vmul.f32 %v721_v17, %v721_v17  ;;  %v822_v55 = vmul.f32 %v722_v59, %v722_v59  ;;  %v759_v17 = vmul.f32 %v655_v20, %v655_v20 }
 0x10e   : > { %v824_v34 = vadd.f32 %v792_v22, %v760_v51 }
 0x10f   : > { %v1920_v5 = vadd.f32 %v821_v37, %v789_v7  ;;  %v1922_v36 = vadd.f32 %v822_v55, %v790_v6  ;;  %v522_v10 = vpop.permute.xlu1 %521  ;;  %v526_v11 = vpop.permute.xlu0 %525  ;;  %v823_v63 = vadd.f32 %v791_v39, %v759_v17  ;;  %v761_v7 = vmul.f32 %v657_v49, %v657_v49 }
 0x110   : > { %v727_v59 = vsub.f32 %v522_v10, %v1912_v61  ;;  %v728_v12 = vsub.f32 %v526_v11, %v1912_v61  ;;  %v763_v37 = vmul.f32 %v659_v4, %v659_v4  ;;  %v661_v6 = vsub.f32 %v1701_v42, %v1778_v1 }
 0x111   : > { %2322 = vst [vmem:[#allocation5_spill] sm:$0xff] %v1922_v36  ;;  %v825_v51 = vadd.f32 %v793_v57, %v761_v7  ;;  %v797_v11 = vmul.f32 %v697_v16, %v697_v16  ;;  %v663_v42 = vsub.f32 %v1707_v44, %v1778_v1  ;;  %v665_v44 = vsub.f32 %v1713_v46, %v1778_v1 }
 0x112   : > { %v855_v53 = vmul.f32 %v727_v59, %v727_v59  ;;  %v856_v40 = vmul.f32 %v728_v12, %v728_v12  ;;  %v827_v39 = vadd.f32 %v795_v31, %v763_v37  ;;  %v765_v35 = vmul.f32 %v661_v6, %v661_v6 }
 0x113   : > { %v530_v55 = vpop.permute.xlu1 %529  ;;  %v538_v20 = vpop.permute.xlu0 %537  ;;  %v667_v46 = vsub.f32 %v1719_v48, %v1778_v1  ;;  %v669_v48 = vsub.f32 %v1725_v50, %v1778_v1  ;;  %v671_v50 = vsub.f32 %v1731_v52, %v1778_v1  ;;  %v673_v52 = vsub.f32 %v1737_v54, %v1778_v1 }
 0x114   : > { %v888_v36 = vadd.f32 %v856_v40, %v824_v34  ;;  %v729_v10 = vsub.f32 %v530_v55, %v1912_v61  ;;  %v731_v22 = vsub.f32 %v538_v20, %v1912_v61  ;;  %v887_v47 = vadd.f32 %v855_v53, %v823_v63 }
 0x115   : > { %v829_v16 = vadd.f32 %v797_v11, %v765_v35  ;;  %v799_v63 = vmul.f32 %v699_v23, %v699_v23  ;;  %v769_v23 = vmul.f32 %v665_v44, %v665_v44  ;;  %v675_v54 = vsub.f32 %v1743_v56, %v1778_v1 }
 0x116   : > { %v857_v12 = vmul.f32 %v729_v10, %v729_v10  ;;  %v859_v49 = vmul.f32 %v731_v22, %v731_v22  ;;  %919 = vmin.xlane.f32.xlu0 %v887_v47  ;;  %921 = vmin.xlane.f32.xlu1 %v888_v36  ;;  %v767_v36 = vmul.f32 %v663_v42, %v663_v42 }
 0x117   : > { %v534_v4 = vpop.permute.xlu1 %533  ;;  %v546_v17 = vpop.permute.xlu0 %545  ;;  %v801_v47 = vmul.f32 %v701_v30, %v701_v30  ;;  %v677_v56 = vsub.f32 %v1749_v58, %v1778_v1  ;;  %v679_v58 = vsub.f32 %v1755_v60, %v1778_v1  ;;  %v681_v60 = vsub.f32 %v1761_v62, %v1778_v1 }
 0x118   : > { %v891_v59 = vadd.f32 %v859_v49, %v827_v39  ;;  %v730_v34 = vsub.f32 %v534_v4, %v1912_v61  ;;  %v733_v53 = vsub.f32 %v546_v17, %v1912_v61  ;;  %v889_v57 = vadd.f32 %v857_v12, %v825_v51 }
 0x119   : > { %v831_v22 = vadd.f32 %v799_v63, %v767_v36  ;;  %v803_v4 = vmul.f32 %v703_v41, %v703_v41  ;;  %v833_v17 = vadd.f32 %v801_v47, %v769_v23  ;;  %v707_v36 = vsub.f32 %v1846_v29, %v1796_v9 }
 0x11a   : > { %v858_v31 = vmul.f32 %v730_v34, %v730_v34  ;;  %v861_v40 = vmul.f32 %v733_v53, %v733_v53  ;;  %923 = vmin.xlane.f32.xlu0 %v889_v57  ;;  %927 = vmin.xlane.f32.xlu1 %v891_v59  ;;  %v771_v53 = vmul.f32 %v667_v46, %v667_v46 }
 0x11b   : > { %v542_v7 = vpop.permute.xlu1 %541  ;;  %v554_v37 = vpop.permute.xlu0 %553  ;;  %v709_v29 = vsub.f32 %v1853_v2, %v1796_v9  ;;  %v807_v47 = vmul.f32 %v707_v36, %v707_v36  ;;  %v775_v23 = vmul.f32 %v671_v50, %v671_v50  ;;  %v711_v2 = vsub.f32 %v1860_v45, %v1796_v9 }
 0x11c   : > { %v890_v6 = vadd.f32 %v858_v31, %v1806_v18  ;;  %v893_v55 = vadd.f32 %v861_v40, %v829_v16  ;;  %v732_v20 = vsub.f32 %v542_v7, %v1912_v61  ;;  %v735_v10 = vsub.f32 %v554_v37, %v1912_v61 }
 0x11d   : > { %v835_v40 = vadd.f32 %v803_v4, %v771_v53  ;;  %v773_v37 = vmul.f32 %v669_v48, %v669_v48  ;;  %v811_v45 = vmul.f32 %v711_v2, %v711_v2  ;;  %v683_v62 = vsub.f32 %v1768_v0, %v1778_v1 }
 0x11e   : > { %v860_v51 = vmul.f32 %v732_v20, %v732_v20  ;;  %v863_v11 = vmul.f32 %v735_v10, %v735_v10  ;;  %925 = vmin.xlane.f32.xlu0 %v890_v6  ;;  %931 = vmin.xlane.f32.xlu1 %v893_v55 }
 0x11f   : > { %v550_v39 = vpop.permute.xlu1 %549  ;;  %v562_v18 = vpop.permute.xlu0 %561  ;;  %v837_v41 = vadd.f32 %v805_v21, %v773_v37 }
 0x120   : > { %v892_v12 = vadd.f32 %v860_v51, %v1813_v25  ;;  %v895_v49 = vadd.f32 %v863_v11, %v831_v22  ;;  %v734_v35 = vsub.f32 %v550_v39, %v1912_v61  ;;  %v737_v42 = vsub.f32 %v562_v18, %v1912_v61 }
 0x122   : > { %v862_v59 = vmul.f32 %v734_v35, %v734_v35  ;;  %v865_v34 = vmul.f32 %v737_v42, %v737_v42  ;;  %929 = vmin.xlane.f32.xlu0 %v892_v12  ;;  %935 = vmin.xlane.f32.xlu1 %v895_v49  ;;  %v809_v35 = vmul.f32 %v709_v29, %v709_v29 }
 0x123   : > { %v558_v57 = vpop.permute.xlu1 %557  ;;  %v570_v25 = vpop.permute.xlu0 %569  ;;  %v839_v42 = vadd.f32 %v807_v47, %v775_v23 }
 0x124   : > { %v894_v16 = vadd.f32 %v862_v59, %v1820_v32  ;;  %v897_v63 = vadd.f32 %v865_v34, %v833_v17  ;;  %v736_v30 = vsub.f32 %v558_v57, %v1912_v61  ;;  %v739_v31 = vsub.f32 %v570_v25, %v1912_v61 }
 0x125   : > { %v777_v17 = vmul.f32 %v673_v52, %v673_v52  ;;  %v783_v52 = vmul.f32 %v679_v58, %v679_v58 }
 0x126   : > { %v864_v44 = vmul.f32 %v736_v30, %v736_v30  ;;  %v867_v7 = vmul.f32 %v739_v31, %v739_v31  ;;  %933 = vmin.xlane.f32.xlu0 %v894_v16  ;;  %939 = vmin.xlane.f32.xlu1 %v897_v63  ;;  %v713_v16 = vsub.f32 %v1867_v26, %v1796_v9 }
 0x127   : > { %v566_v6 = vpop.permute.xlu1 %565  ;;  %v578_v32 = vpop.permute.xlu0 %577  ;;  %v841_v25 = vadd.f32 %v809_v35, %v777_v17  ;;  %v779_v31 = vmul.f32 %v675_v54, %v675_v54  ;;  %v715_v26 = vsub.f32 %v1874_v38, %v1796_v9  ;;  %v717_v38 = vsub.f32 %v1881_v14, %v1796_v9 }
 0x128   : > { %v896_v55 = vadd.f32 %v864_v44, %v1827_v3  ;;  %v899_v20 = vadd.f32 %v867_v7, %v835_v40  ;;  %v738_v10 = vsub.f32 %v566_v6, %v1912_v61  ;;  %v741_v22 = vsub.f32 %v578_v32, %v1912_v61 }
 0x129   : > { %v843_v37 = vadd.f32 %v811_v45, %v779_v31  ;;  %v813_v50 = vmul.f32 %v713_v16, %v713_v16  ;;  %v815_v47 = vmul.f32 %v715_v26, %v715_v26  ;;  %v817_v14 = vmul.f32 %v717_v38, %v717_v38  ;;  %v2324_v26 = vld [vmem:[#allocation3_spill] sm:$0xff] }
 0x12a   : > { %v866_v51 = vmul.f32 %v738_v10, %v738_v10  ;;  %v869_v11 = vmul.f32 %v741_v22, %v741_v22  ;;  %937 = vmin.xlane.f32.xlu0 %v896_v55  ;;  %943 = vmin.xlane.f32.xlu1 %v899_v20  ;;  %v781_v55 = vmul.f32 %v677_v56, %v677_v56 }
 0x12b   : > { %v574_v46 = vpop.permute.xlu1 %573  ;;  %v586_v3 = vpop.permute.xlu0 %585  ;;  %v719_v35 = vsub.f32 %v1888_v27, %v1796_v9 }
 0x12c   : > { %v898_v39 = vadd.f32 %v866_v51, %v1834_v15  ;;  %v901_v18 = vadd.f32 %v869_v11, %v837_v41  ;;  %v740_v12 = vsub.f32 %v574_v46, %v1912_v61  ;;  %v743_v49 = vsub.f32 %v586_v3, %v1912_v61 }
 0x12d   : > { %v845_v51 = vadd.f32 %v813_v50, %v781_v55 }
 0x12e   : > { %v868_v4 = vmul.f32 %v740_v12, %v740_v12  ;;  %v871_v13 = vmul.f32 %v743_v49, %v743_v49  ;;  %941 = vmin.xlane.f32.xlu0 %v898_v39  ;;  %947 = vmin.xlane.f32.xlu1 %v901_v18  ;;  %v847_v49 = vadd.f32 %v815_v47, %v783_v52 }
 0x12f   : > { %v582_v59 = vpop.permute.xlu1 %581  ;;  %v594_v15 = vpop.permute.xlu0 %593 }
 0x130   : > { %v900_v34 = vadd.f32 %v868_v4, %v1841_v24  ;;  %v903_v53 = vadd.f32 %v871_v13, %v839_v42  ;;  %v742_v48 = vsub.f32 %v582_v59, %v1912_v61  ;;  %v745_v57 = vsub.f32 %v594_v15, %v1912_v61 }
 0x131   : > { %v785_v4 = vmul.f32 %v681_v60, %v681_v60 }
 0x132   : > { %v870_v63 = vmul.f32 %v742_v48, %v742_v48  ;;  %v873_v30 = vmul.f32 %v745_v57, %v745_v57  ;;  %945 = vmin.xlane.f32.xlu0 %v900_v34  ;;  %951 = vmin.xlane.f32.xlu1 %v903_v53  ;;  %v819_v53 = vmul.f32 %v719_v35, %v719_v35 }
 0x133   : > { %v590_v40 = vpop.permute.xlu1 %589  ;;  %v602_v24 = vpop.permute.xlu0 %601  ;;  %v849_v34 = vadd.f32 %v817_v14, %v785_v4  ;;  %v787_v48 = vmul.f32 %v683_v62, %v683_v62 }
 0x134   : > { %v902_v21 = vadd.f32 %v870_v63, %v1848_v33  ;;  %v905_v36 = vadd.f32 %v873_v30, %v841_v25  ;;  %v744_v44 = vsub.f32 %v590_v40, %v1912_v61  ;;  %v747_v7 = vsub.f32 %v602_v24, %v1912_v61  ;;  %v2323_v40 = vld [vmem:[#allocation2_spill] sm:$0xff] }
 0x135   : > { %v851_v16 = vadd.f32 %v819_v53, %v787_v48 }
 0x136   : > { %v872_v6 = vmul.f32 %v744_v44, %v744_v44  ;;  %v875_v32 = vmul.f32 %v747_v7, %v747_v7  ;;  %949 = vmin.xlane.f32.xlu0 %v902_v21  ;;  %955 = vmin.xlane.f32.xlu1 %v905_v36 }
 0x137   : > { %v598_v20 = vpop.permute.xlu1 %597  ;;  %v610_v33 = vpop.permute.xlu0 %609 }
 0x138   : > { %v904_v10 = vadd.f32 %v872_v6, %v1855_v8  ;;  %v907_v22 = vadd.f32 %v875_v32, %v843_v37  ;;  %v746_v41 = vsub.f32 %v598_v20, %v1912_v61  ;;  %v749_v29 = vsub.f32 %v610_v33, %v1912_v61  ;;  %v2325_v20 = vld [vmem:[#allocation4_spill] sm:$0xff] }
 0x13a   : > { %v874_v11 = vmul.f32 %v746_v41, %v746_v41  ;;  %v877_v23 = vmul.f32 %v749_v29, %v749_v29  ;;  %953 = vmin.xlane.f32.xlu0 %v904_v10  ;;  %959 = vmin.xlane.f32.xlu1 %v907_v22  ;;  %v2326_v41 = vld [vmem:[#allocation5_spill] sm:$0xff] }
 0x13b   : > { %v606_v46 = vpop.permute.xlu1 %605  ;;  %v618_v8 = vpop.permute.xlu0 %617 }
 0x13c   : > { %v906_v3 = vadd.f32 %v874_v11, %v1862_v19  ;;  %v909_v39 = vadd.f32 %v877_v23, %v845_v51  ;;  %v748_v18 = vsub.f32 %v606_v46, %v1912_v61  ;;  %v751_v12 = vsub.f32 %v618_v8, %v1912_v61 }
 0x13e   : > { %v876_v2 = vmul.f32 %v748_v18, %v748_v18  ;;  %v879_v42 = vmul.f32 %v751_v12, %v751_v12  ;;  %957 = vmin.xlane.f32.xlu0 %v906_v3  ;;  %963 = vmin.xlane.f32.xlu1 %v909_v39 }
 0x13f   : > { %v614_v13 = vpop.permute.xlu1 %613  ;;  %v626_v19 = vpop.permute.xlu0 %625 }
 0x140   : > { %v908_v17 = vadd.f32 %v876_v2, %v1869_v28  ;;  %v911_v54 = vadd.f32 %v879_v42, %v847_v49  ;;  %v750_v59 = vsub.f32 %v614_v13, %v1912_v61  ;;  %v753_v15 = vsub.f32 %v626_v19, %v1912_v61 }
 0x142   : > { %v878_v9 = vmul.f32 %v750_v59, %v750_v59  ;;  %v881_v27 = vmul.f32 %v753_v15, %v753_v15  ;;  %961 = vmin.xlane.f32.xlu0 %v908_v17  ;;  %967 = vmin.xlane.f32.xlu1 %v911_v54 }
 0x143   : > { %v622_v57 = vpop.permute.xlu1 %621  ;;  %v634_v25 = vpop.permute.xlu0 %633 }
 0x144   : > { %v910_v0 = vadd.f32 %v878_v9, %v1876_v43  ;;  %v913_v1 = vadd.f32 %v881_v27, %v849_v34  ;;  %v752_v45 = vsub.f32 %v622_v57, %v1912_v61  ;;  %v755_v28 = vsub.f32 %v634_v25, %v1912_v61 }
 0x146   : > { %v880_v63 = vmul.f32 %v752_v45, %v752_v45  ;;  %v883_v30 = vmul.f32 %v755_v28, %v755_v28  ;;  %965 = vmin.xlane.f32.xlu0 %v910_v0  ;;  %971 = vmin.xlane.f32.xlu1 %v913_v1 }
 0x147   : > { %v630_v31 = vpop.permute.xlu1 %629  ;;  %v642_v56 = vpop.permute.xlu0 %641 }
 0x148   : > { %v912_v24 = vadd.f32 %v880_v63, %v2323_v40  ;;  %v915_v21 = vadd.f32 %v883_v30, %v851_v16  ;;  %v754_v36 = vsub.f32 %v630_v31, %v1912_v61  ;;  %v757_v44 = vsub.f32 %v642_v56, %v1912_v61 }
 0x14a   : > { %v882_v43 = vmul.f32 %v754_v36, %v754_v36  ;;  %v885_v7 = vmul.f32 %v757_v44, %v757_v44  ;;  %969 = vmin.xlane.f32.xlu0 %v912_v24  ;;  %975 = vmin.xlane.f32.xlu1 %v915_v21 }
 0x14b   : > { %v638_v37 = vpop.permute.xlu1 %637 }
 0x14c   : > { %v914_v50 = vadd.f32 %v882_v43, %v2324_v26  ;;  %v917_v6 = vadd.f32 %v885_v7, %v1920_v5  ;;  %v756_v32 = vsub.f32 %v638_v37, %v1912_v61 }
 0x14e   : > { %v884_v55 = vmul.f32 %v756_v32, %v756_v32  ;;  %973 = vmin.xlane.f32.xlu0 %v914_v50  ;;  %979 = vmin.xlane.f32.xlu1 %v917_v6 }
 0x14f   : > { %v646_v58 = vpop.permute.xlu1 %645 }
 0x150   : > { %v916_v33 = vadd.f32 %v884_v55, %v2325_v20  ;;  %v758_v10 = vsub.f32 %v646_v58, %v1912_v61 }
 0x152   : > { %v886_v22 = vmul.f32 %v758_v10, %v758_v10  ;;  %977 = vmin.xlane.f32.xlu0 %v916_v33 }
 0x154   : > { %v918_v29 = vadd.f32 %v886_v22, %v2326_v41 }
 0x156   : > { %981 = vmin.xlane.f32.xlu0 %v918_v29 }
 0x19f   : > { %v922_v47 = vpop.xlane.xlu1 %921  ;;  %v920_v38 = vpop.xlane.xlu0 %919 }
 0x1a0   : > { %1389 = vrsqrt.f32 %v922_v47  ;;  %vm992_vm1 = vcmp.eq.f32.partialorder %v922_v47, inf  ;;  %vm994_vm2 = vcmp.eq.f32.partialorder %v922_v47, 0.0  ;;  %v995_v3 = vand.u32 2147483648, %v922_v47 }
 0x1a1   : > { %1391 = vrsqrt.f32 %v920_v38  ;;  %vm985_vm3 = vcmp.eq.f32.partialorder %v920_v38, inf  ;;  %v988_v14 = vand.u32 2147483648, %v920_v38  ;;  %vm987_vm4 = vcmp.eq.f32.partialorder %v920_v38, 0.0 }
 0x1a3   : > { %v928_v5 = vpop.xlane.xlu1 %927  ;;  %v924_v51 = vpop.xlane.xlu0 %923 }
 0x1a4   : > { %1393 = vrsqrt.f32 %v928_v5  ;;  %vm1013_vm5 = vcmp.eq.f32.partialorder %v928_v5, inf  ;;  %vm1015_vm6 = vcmp.eq.f32.partialorder %v928_v5, 0.0  ;;  %v1016_v19 = vand.u32 2147483648, %v928_v5 }
 0x1a5   : > { %1395 = vrsqrt.f32 %v924_v51  ;;  %vm999_vm7 = vcmp.eq.f32.partialorder %v924_v51, inf  ;;  %v1002_v34 = vand.u32 2147483648, %v924_v51  ;;  %vm1001_vm8 = vcmp.eq.f32.partialorder %v924_v51, 0.0 }
 0x1a7   : > { %v2020_v11 = vpop.xlane.xlu1 %931  ;;  %v2022_v23 = vpop.xlane.xlu0 %925 }
 0x1a8   : > { %1397 = vrsqrt.f32 %v2020_v11  ;;  %vm1027_vm9 = vcmp.eq.f32.partialorder %v2020_v11, inf  ;;  %vm1029_vm10 = vcmp.eq.f32.partialorder %v2020_v11, 0.0  ;;  %v1030_v0 = vand.u32 2147483648, %v2020_v11 }
 0x1a9   : > { %1399 = vrsqrt.f32 %v2022_v23  ;;  %vm1006_vm11 = vcmp.eq.f32.partialorder %v2022_v23, inf  ;;  %v1009_v63 = vand.u32 2147483648, %v2022_v23  ;;  %vm1008_vm12 = vcmp.eq.f32.partialorder %v2022_v23, 0.0 }
 0x1ab   : > { %v2026_v61 = vpop.xlane.xlu1 %935  ;;  %v2028_v52 = vpop.xlane.xlu0 %929 }
 0x1ac   : > { %1401 = vrsqrt.f32 %v2026_v61  ;;  %vm1041_vm13 = vcmp.eq.f32.partialorder %v2026_v61, inf  ;;  %vm1043_vm14 = vcmp.eq.f32.partialorder %v2026_v61, 0.0  ;;  %v1044_v36 = vand.u32 2147483648, %v2026_v61 }
 0x1ad   : > { %v1390_v60 = vpop.eup %1389  ;;  %1403 = vrsqrt.f32 %v2028_v52  ;;  %vm1020_vm15 = vcmp.eq.f32.partialorder %v2028_v52, inf  ;;  %v1023_v26 = vand.u32 2147483648, %v2028_v52 }
 0x1ae   : > { %v1392_v46 = vpop.eup %1391  ;;  %v991_v8 = vmul.f32 %v1390_v60, %v922_v47 }
 0x1af   : > { %v984_v39 = vmul.f32 %v1392_v46, %v920_v38  ;;  %v2039_v18 = vpop.xlane.xlu1 %939  ;;  %v2041_v12 = vpop.xlane.xlu0 %933 }
 0x1b0   : > { %v993_v49 = vsel %vm992_vm1, %v922_v47, %v991_v8  ;;  %1405 = vrsqrt.f32 %v2039_v18  ;;  %vm1022_vm1 = vcmp.eq.f32.partialorder %v2028_v52, 0.0  ;;  %v1058_v33 = vand.u32 2147483648, %v2039_v18 }
 0x1b1   : > { %v1394_v35 = vpop.eup %1393  ;;  %v996_v2 = vsel %vm994_vm2, %v995_v3, %v993_v49  ;;  %v986_v42 = vsel %vm985_vm3, %v920_v38, %v984_v39  ;;  %1407 = vrsqrt.f32 %v2041_v12  ;;  %vm1055_vm2 = vcmp.eq.f32.partialorder %v2039_v18, inf }
 0x1b2   : > { %v1396_v4 = vpop.eup %1395  ;;  %1209 = vst.msk [vmem:[%s2037_s23 + $0x8] sm:$0xff] %vm1207_vm0, %v996_v2  ;;  %v989_v62 = vsel %vm987_vm4, %v988_v14, %v986_v42  ;;  %v1012_v13 = vmul.f32 %v1394_v35, %v928_v5  ;;  %vm1057_vm3 = vcmp.eq.f32.partialorder %v2039_v18, 0.0  ;;  %vm1034_vm4 = vcmp.eq.f32.partialorder %v2041_v12, inf }
 0x1b3   : > { %1208 = vst.msk [vmem:[%s2037_s23] sm:$0xff] %vm1207_vm0, %v989_v62  ;;  %v998_v17 = vmul.f32 %v1396_v4, %v924_v51  ;;  %v2049_v54 = vpop.xlane.xlu1 %943  ;;  %v2051_v59 = vpop.xlane.xlu0 %937  ;;  %v1037_v47 = vand.u32 2147483648, %v2041_v12 }
 0x1b4   : > { %v1014_v15 = vsel %vm1013_vm5, %v928_v5, %v1012_v13  ;;  %1409 = vrsqrt.f32 %v2049_v54  ;;  %vm1036_vm5 = vcmp.eq.f32.partialorder %v2041_v12, 0.0  ;;  %v1051_v39 = vand.u32 2147483648, %v2051_v59 }
 0x1b5   : > { %v1398_v53 = vpop.eup %1397  ;;  %v1017_v9 = vsel %vm1015_vm6, %v1016_v19, %v1014_v15  ;;  %v1000_v27 = vsel %vm999_vm7, %v924_v51, %v998_v17  ;;  %1411 = vrsqrt.f32 %v2051_v59  ;;  %vm1069_vm6 = vcmp.eq.f32.partialorder %v2049_v54, inf }
 0x1b6   : > { %v1400_v48 = vpop.eup %1399  ;;  %1212 = vst.msk [vmem:[%s2037_s23 + $0x20] sm:$0xff] %vm1207_vm0, %v1017_v9  ;;  %v1003_v57 = vsel %vm1001_vm8, %v1002_v34, %v1000_v27  ;;  %v1026_v25 = vmul.f32 %v1398_v53, %v2020_v11  ;;  %vm1071_vm7 = vcmp.eq.f32.partialorder %v2049_v54, 0.0  ;;  %vm1048_vm8 = vcmp.eq.f32.partialorder %v2051_v59, inf }
 0x1b7   : > { %1210 = vst.msk [vmem:[%s2037_s23 + $0x10] sm:$0xff] %vm1207_vm0, %v1003_v57  ;;  %v1005_v1 = vmul.f32 %v1400_v48, %v2022_v23  ;;  %v2064_v45 = vpop.xlane.xlu1 %947  ;;  %v2066_v28 = vpop.xlane.xlu0 %941 }
 0x1b8   : > { %v1028_v16 = vsel %vm1027_vm9, %v2020_v11, %v1026_v25  ;;  %1413 = vrsqrt.f32 %v2064_v45  ;;  %vm1050_vm9 = vcmp.eq.f32.partialorder %v2051_v59, 0.0  ;;  %v1086_v42 = vand.u32 2147483648, %v2064_v45 }
 0x1b9   : > { %v1402_v30 = vpop.eup %1401  ;;  %v1031_v31 = vsel %vm1029_vm10, %v1030_v0, %v1028_v16  ;;  %v1007_v56 = vsel %vm1006_vm11, %v2022_v23, %v1005_v1  ;;  %1415 = vrsqrt.f32 %v2066_v28  ;;  %vm1083_vm10 = vcmp.eq.f32.partialorder %v2064_v45, inf }
 0x1ba   : > { %v1404_v40 = vpop.eup %1403  ;;  %1214 = vst.msk [vmem:[%s2037_s23 + $0x30] sm:$0xff] %vm1207_vm0, %v1031_v31  ;;  %v1010_v24 = vsel %vm1008_vm12, %v1009_v63, %v1007_v56  ;;  %v1040_v21 = vmul.f32 %v1402_v30, %v2026_v61  ;;  %vm1085_vm11 = vcmp.eq.f32.partialorder %v2064_v45, 0.0  ;;  %vm1062_vm12 = vcmp.eq.f32.partialorder %v2066_v28, inf }
 0x1bb   : > { %1211 = vst.msk [vmem:[%s2037_s23 + $0x18] sm:$0xff] %vm1207_vm0, %v1010_v24  ;;  %v1019_v44 = vmul.f32 %v1404_v40, %v2028_v52  ;;  %v2084_v43 = vpop.xlane.xlu1 %951  ;;  %v2086_v7 = vpop.xlane.xlu0 %945  ;;  %v1065_v17 = vand.u32 2147483648, %v2066_v28 }
 0x1bc   : > { %v1042_v37 = vsel %vm1041_vm13, %v2026_v61, %v1040_v21  ;;  %1417 = vrsqrt.f32 %v2084_v43  ;;  %vm1064_vm13 = vcmp.eq.f32.partialorder %v2066_v28, 0.0  ;;  %v1100_v27 = vand.u32 2147483648, %v2084_v43 }
 0x1bd   : > { %v1406_v50 = vpop.eup %1405  ;;  %v1045_v6 = vsel %vm1043_vm14, %v1044_v36, %v1042_v37  ;;  %v1021_v32 = vsel %vm1020_vm15, %v2028_v52, %v1019_v44  ;;  %1419 = vrsqrt.f32 %v2086_v7  ;;  %v1072_v52 = vand.u32 2147483648, %v2049_v54 }
 0x1be   : > { %v1408_v55 = vpop.eup %1407  ;;  %1216 = vst.msk [vmem:[%s2037_s23 + $0x40] sm:$0xff] %vm1207_vm0, %v1045_v6  ;;  %v1024_v58 = vsel %vm1022_vm1, %v1023_v26, %v1021_v32  ;;  %v1054_v20 = vmul.f32 %v1406_v50, %v2039_v18  ;;  %vm1097_vm14 = vcmp.eq.f32.partialorder %v2084_v43, inf  ;;  %vm1099_vm15 = vcmp.eq.f32.partialorder %v2084_v43, 0.0 }
 0x1bf   : > { %1213 = vst.msk [vmem:[%s2037_s23 + $0x28] sm:$0xff] %vm1207_vm0, %v1024_v58  ;;  %v1033_v10 = vmul.f32 %v1408_v55, %v2041_v12  ;;  %v2104_v22 = vpop.xlane.xlu1 %955  ;;  %v2106_v41 = vpop.xlane.xlu0 %949  ;;  %vm1076_vm1 = vcmp.eq.f32.partialorder %v2086_v7, inf  ;;  %v1079_v1 = vand.u32 2147483648, %v2086_v7 }
 0x1c0   : > { %v1056_v29 = vsel %vm1055_vm2, %v2039_v18, %v1054_v20  ;;  %1421 = vrsqrt.f32 %v2104_v22  ;;  %vm1078_vm2 = vcmp.eq.f32.partialorder %v2086_v7, 0.0  ;;  %v1114_v56 = vand.u32 2147483648, %v2104_v22 }
 0x1c1   : > { %v1410_v38 = vpop.eup %1409  ;;  %v1059_v5 = vsel %vm1057_vm3, %v1058_v33, %v1056_v29  ;;  %v1035_v51 = vsel %vm1034_vm4, %v2041_v12, %v1033_v10  ;;  %1423 = vrsqrt.f32 %v2106_v41  ;;  %vm1111_vm3 = vcmp.eq.f32.partialorder %v2104_v22, inf }
 0x1c2   : > { %v1412_v11 = vpop.eup %1411  ;;  %1218 = vst.msk [vmem:[%s2037_s23 + $0x50] sm:$0xff] %vm1207_vm0, %v1059_v5  ;;  %v1038_v23 = vsel %vm1036_vm5, %v1037_v47, %v1035_v51  ;;  %v1068_v61 = vmul.f32 %v1410_v38, %v2049_v54  ;;  %vm1113_vm4 = vcmp.eq.f32.partialorder %v2104_v22, 0.0  ;;  %vm1090_vm5 = vcmp.eq.f32.partialorder %v2106_v41, inf }
 0x1c3   : > { %1215 = vst.msk [vmem:[%s2037_s23 + $0x38] sm:$0xff] %vm1207_vm0, %v1038_v23  ;;  %v1047_v60 = vmul.f32 %v1412_v11, %v2051_v59  ;;  %v2124_v46 = vpop.xlane.xlu1 %959  ;;  %v2126_v8 = vpop.xlane.xlu0 %953  ;;  %v1093_v44 = vand.u32 2147483648, %v2106_v41 }
 0x1c4   : > { %v1070_v3 = vsel %vm1069_vm6, %v2049_v54, %v1068_v61  ;;  %1425 = vrsqrt.f32 %v2124_v46  ;;  %vm1092_vm6 = vcmp.eq.f32.partialorder %v2106_v41, 0.0  ;;  %v1128_v32 = vand.u32 2147483648, %v2124_v46 }
 0x1c5   : > { %v1414_v18 = vpop.eup %1413  ;;  %v1073_v12 = vsel %vm1071_vm7, %v1072_v52, %v1070_v3  ;;  %v1049_v49 = vsel %vm1048_vm8, %v2051_v59, %v1047_v60  ;;  %1427 = vrsqrt.f32 %v2126_v8  ;;  %vm1125_vm7 = vcmp.eq.f32.partialorder %v2124_v46, inf }
 0x1c6   : > { %v1416_v14 = vpop.eup %1415  ;;  %1220 = vst.msk [vmem:[%s2037_s23 + $0x60] sm:$0xff] %vm1207_vm0, %v1073_v12  ;;  %v1052_v35 = vsel %vm1050_vm9, %v1051_v39, %v1049_v49  ;;  %v1082_v2 = vmul.f32 %v1414_v18, %v2064_v45  ;;  %vm1127_vm8 = vcmp.eq.f32.partialorder %v2124_v46, 0.0  ;;  %vm1104_vm9 = vcmp.eq.f32.partialorder %v2126_v8, inf }
 0x1c7   : > { %1217 = vst.msk [vmem:[%s2037_s23 + $0x48] sm:$0xff] %vm1207_vm0, %v1052_v35  ;;  %v1061_v4 = vmul.f32 %v1416_v14, %v2066_v28  ;;  %v2144_v62 = vpop.xlane.xlu1 %963  ;;  %v2146_v13 = vpop.xlane.xlu0 %957  ;;  %v1107_v10 = vand.u32 2147483648, %v2126_v8 }
 0x1c8   : > { %v1084_v19 = vsel %vm1083_vm10, %v2064_v45, %v1082_v2  ;;  %1429 = vrsqrt.f32 %v2144_v62  ;;  %vm1106_vm10 = vcmp.eq.f32.partialorder %v2126_v8, 0.0  ;;  %v1142_v51 = vand.u32 2147483648, %v2144_v62 }
 0x1c9   : > { %v1418_v54 = vpop.eup %1417  ;;  %v1087_v59 = vsel %vm1085_vm11, %v1086_v42, %v1084_v19  ;;  %v1063_v15 = vsel %vm1062_vm12, %v2066_v28, %v1061_v4  ;;  %1431 = vrsqrt.f32 %v2146_v13  ;;  %vm1139_vm11 = vcmp.eq.f32.partialorder %v2144_v62, inf }
 0x1ca   : > { %v1420_v34 = vpop.eup %1419  ;;  %1222 = vst.msk [vmem:[%s2037_s23 + $0x70] sm:$0xff] %vm1207_vm0, %v1087_v59  ;;  %v1066_v53 = vsel %vm1064_vm13, %v1065_v17, %v1063_v15  ;;  %v1096_v9 = vmul.f32 %v1418_v54, %v2084_v43  ;;  %vm1141_vm12 = vcmp.eq.f32.partialorder %v2144_v62, 0.0  ;;  %vm1118_vm13 = vcmp.eq.f32.partialorder %v2146_v13, inf }
 0x1cb   : > { %1219 = vst.msk [vmem:[%s2037_s23 + $0x58] sm:$0xff] %vm1207_vm0, %v1066_v53  ;;  %v1075_v48 = vmul.f32 %v1420_v34, %v2086_v7  ;;  %v2164_v57 = vpop.xlane.xlu1 %967  ;;  %v2166_v25 = vpop.xlane.xlu0 %961  ;;  %v1121_v60 = vand.u32 2147483648, %v2146_v13 }
 0x1cc   : > { %v1098_v0 = vsel %vm1097_vm14, %v2084_v43, %v1096_v9  ;;  %1433 = vrsqrt.f32 %v2164_v57  ;;  %vm1120_vm14 = vcmp.eq.f32.partialorder %v2146_v13, 0.0  ;;  %v1156_v49 = vand.u32 2147483648, %v2164_v57 }
 0x1cd   : > { %v1422_v45 = vpop.eup %1421  ;;  %v1101_v28 = vsel %vm1099_vm15, %v1100_v27, %v1098_v0  ;;  %v1077_v16 = vsel %vm1076_vm1, %v2086_v7, %v1075_v48  ;;  %1435 = vrsqrt.f32 %v2166_v25  ;;  %vm1153_vm15 = vcmp.eq.f32.partialorder %v2164_v57, inf }
 0x1ce   : > { %v1424_v63 = vpop.eup %1423  ;;  %1224 = vst.msk [vmem:[%s2037_s23 + $0x80] sm:$0xff] %vm1207_vm0, %v1101_v28  ;;  %v1080_v30 = vsel %vm1078_vm2, %v1079_v1, %v1077_v16  ;;  %v1110_v31 = vmul.f32 %v1422_v45, %v2104_v22  ;;  %vm1155_vm1 = vcmp.eq.f32.partialorder %v2164_v57, 0.0  ;;  %vm1132_vm2 = vcmp.eq.f32.partialorder %v2166_v25, inf }
 0x1cf   : > { %1221 = vst.msk [vmem:[%s2037_s23 + $0x68] sm:$0xff] %vm1207_vm0, %v1080_v30  ;;  %v1089_v40 = vmul.f32 %v1424_v63, %v2106_v41  ;;  %v2184_v24 = vpop.xlane.xlu1 %971  ;;  %v2186_v21 = vpop.xlane.xlu0 %965  ;;  %v1135_v42 = vand.u32 2147483648, %v2166_v25 }
 0x1d0   : > { %v1112_v36 = vsel %vm1111_vm3, %v2104_v22, %v1110_v31  ;;  %1437 = vrsqrt.f32 %v2184_v24  ;;  %vm1134_vm3 = vcmp.eq.f32.partialorder %v2166_v25, 0.0  ;;  %v1170_v59 = vand.u32 2147483648, %v2184_v24 }
 0x1d1   : > { %v1426_v43 = vpop.eup %1425  ;;  %v1115_v7 = vsel %vm1113_vm4, %v1114_v56, %v1112_v36  ;;  %v1091_v37 = vsel %vm1090_vm5, %v2106_v41, %v1089_v40  ;;  %1439 = vrsqrt.f32 %v2186_v21  ;;  %vm1167_vm4 = vcmp.eq.f32.partialorder %v2184_v24, inf }
 0x1d2   : > { %v1428_v26 = vpop.eup %1427  ;;  %1226 = vst.msk [vmem:[%s2037_s23 + $0x90] sm:$0xff] %vm1207_vm0, %v1115_v7  ;;  %v1094_v50 = vsel %vm1092_vm6, %v1093_v44, %v1091_v37  ;;  %v1124_v6 = vmul.f32 %v1426_v43, %v2124_v46  ;;  %vm1169_vm5 = vcmp.eq.f32.partialorder %v2184_v24, 0.0  ;;  %vm1146_vm6 = vcmp.eq.f32.partialorder %v2186_v21, inf }
 0x1d3   : > { %1223 = vst.msk [vmem:[%s2037_s23 + $0x78] sm:$0xff] %vm1207_vm0, %v1094_v50  ;;  %v1103_v55 = vmul.f32 %v1428_v26, %v2126_v8  ;;  %v2204_v58 = vpop.xlane.xlu1 %975  ;;  %v2206_v20 = vpop.xlane.xlu0 %969  ;;  %v1149_v9 = vand.u32 2147483648, %v2186_v21 }
 0x1d4   : > { %v1126_v33 = vsel %vm1125_vm7, %v2124_v46, %v1124_v6  ;;  %1441 = vrsqrt.f32 %v2204_v58  ;;  %vm1148_vm7 = vcmp.eq.f32.partialorder %v2186_v21, 0.0  ;;  %v1184_v45 = vand.u32 2147483648, %v2204_v58 }
 0x1d5   : > { %v1430_v22 = vpop.eup %1429  ;;  %v1129_v41 = vsel %vm1127_vm8, %v1128_v32, %v1126_v33  ;;  %v1105_v29 = vsel %vm1104_vm9, %v2126_v8, %v1103_v55  ;;  %1443 = vrsqrt.f32 %v2206_v20  ;;  %vm1181_vm8 = vcmp.eq.f32.partialorder %v2204_v58, inf }
 0x1d6   : > { %v1432_v47 = vpop.eup %1431  ;;  %1228 = vst.msk [vmem:[%s2037_s23 + $0xa0] sm:$0xff] %vm1207_vm0, %v1129_v41  ;;  %v1108_v38 = vsel %vm1106_vm10, %v1107_v10, %v1105_v29  ;;  %v1138_v5 = vmul.f32 %v1430_v22, %v2144_v62  ;;  %vm1183_vm9 = vcmp.eq.f32.partialorder %v2204_v58, 0.0  ;;  %vm1160_vm10 = vcmp.eq.f32.partialorder %v2206_v20, inf }
 0x1d7   : > { %1225 = vst.msk [vmem:[%s2037_s23 + $0x88] sm:$0xff] %vm1207_vm0, %v1108_v38  ;;  %v1117_v11 = vmul.f32 %v1432_v47, %v2146_v13  ;;  %v2224_v23 = vpop.xlane.xlu1 %979  ;;  %v2226_v61 = vpop.xlane.xlu0 %973  ;;  %v1163_v63 = vand.u32 2147483648, %v2206_v20 }
 0x1d8   : > { %v1140_v52 = vsel %vm1139_vm11, %v2144_v62, %v1138_v5  ;;  %1445 = vrsqrt.f32 %v2224_v23  ;;  %vm1162_vm11 = vcmp.eq.f32.partialorder %v2206_v20, 0.0  ;;  %v1198_v36 = vand.u32 2147483648, %v2224_v23 }
 0x1d9   : > { %v1434_v46 = vpop.eup %1433  ;;  %v1143_v8 = vsel %vm1141_vm12, %v1142_v51, %v1140_v52  ;;  %v1119_v3 = vsel %vm1118_vm13, %v2146_v13, %v1117_v11  ;;  %1447 = vrsqrt.f32 %v2226_v61  ;;  %vm1195_vm12 = vcmp.eq.f32.partialorder %v2224_v23, inf }
 0x1da   : > { %v1436_v39 = vpop.eup %1435  ;;  %1230 = vst.msk [vmem:[%s2037_s23 + $0xb0] sm:$0xff] %vm1207_vm0, %v1143_v8  ;;  %v1122_v18 = vsel %vm1120_vm14, %v1121_v60, %v1119_v3  ;;  %v1152_v12 = vmul.f32 %v1434_v46, %v2164_v57  ;;  %vm1197_vm13 = vcmp.eq.f32.partialorder %v2224_v23, 0.0  ;;  %vm1174_vm14 = vcmp.eq.f32.partialorder %v2226_v61, inf }
 0x1db   : > { %1227 = vst.msk [vmem:[%s2037_s23 + $0x98] sm:$0xff] %vm1207_vm0, %v1122_v18  ;;  %v1131_v14 = vmul.f32 %v1436_v39, %v2166_v25  ;;  %v2244_v35 = vpop.xlane.xlu0 %977  ;;  %v1177_v7 = vand.u32 2147483648, %v2226_v61 }
 0x1dc   : > { %v1154_v2 = vsel %vm1153_vm15, %v2164_v57, %v1152_v12  ;;  %1449 = vrsqrt.f32 %v2244_v35  ;;  %vm1176_vm15 = vcmp.eq.f32.partialorder %v2226_v61, 0.0  ;;  %v1191_v55 = vand.u32 2147483648, %v2244_v35 }
 0x1dd   : > { %v1438_v4 = vpop.eup %1437  ;;  %v1157_v62 = vsel %vm1155_vm1, %v1156_v49, %v1154_v2  ;;  %v1133_v13 = vsel %vm1132_vm2, %v2166_v25, %v1131_v14  ;;  %vm1188_vm1 = vcmp.eq.f32.partialorder %v2244_v35, inf  ;;  %vm1190_vm2 = vcmp.eq.f32.partialorder %v2244_v35, 0.0 }
 0x1de   : > { %v1440_v19 = vpop.eup %1439  ;;  %1232 = vst.msk [vmem:[%s2037_s23 + $0xc0] sm:$0xff] %vm1207_vm0, %v1157_v62  ;;  %v1136_v17 = vsel %vm1134_vm3, %v1135_v42, %v1133_v13  ;;  %v1166_v54 = vmul.f32 %v1438_v4, %v2184_v24 }
 0x1df   : > { %1229 = vst.msk [vmem:[%s2037_s23 + $0xa8] sm:$0xff] %vm1207_vm0, %v1136_v17  ;;  %v1145_v15 = vmul.f32 %v1440_v19, %v2186_v21  ;;  %v982_v34 = vpop.xlane.xlu0 %981 }
 0x1e0   : > { %v1168_v53 = vsel %vm1167_vm4, %v2184_v24, %v1166_v54  ;;  %1451 = vrsqrt.f32 %v982_v34  ;;  %vm1202_vm3 = vcmp.eq.f32.partialorder %v982_v34, inf  ;;  %v1205_v22 = vand.u32 2147483648, %v982_v34 }
 0x1e1   : > { %v1442_v27 = vpop.eup %1441  ;;  %v1171_v48 = vsel %vm1169_vm5, %v1170_v59, %v1168_v53  ;;  %v1147_v57 = vsel %vm1146_vm6, %v2186_v21, %v1145_v15  ;;  %vm1204_vm4 = vcmp.eq.f32.partialorder %v982_v34, 0.0 }
 0x1e2   : > { %v1444_v25 = vpop.eup %1443  ;;  %1234 = vst.msk [vmem:[%s2037_s23 + $0xd0] sm:$0xff] %vm1207_vm0, %v1171_v48  ;;  %v1150_v0 = vsel %vm1148_vm7, %v1149_v9, %v1147_v57  ;;  %v1180_v1 = vmul.f32 %v1442_v27, %v2204_v58 }
 0x1e3   : > { %1231 = vst.msk [vmem:[%s2037_s23 + $0xb8] sm:$0xff] %vm1207_vm0, %v1150_v0  ;;  %v1159_v28 = vmul.f32 %v1444_v25, %v2206_v20 }
 0x1e4   : > { %v1182_v16 = vsel %vm1181_vm8, %v2204_v58, %v1180_v1 }
 0x1e5   : > { %v1446_v30 = vpop.eup %1445  ;;  %v1185_v31 = vsel %vm1183_vm9, %v1184_v45, %v1182_v16  ;;  %v1161_v56 = vsel %vm1160_vm10, %v2206_v20, %v1159_v28 }
 0x1e6   : > { %v1448_v40 = vpop.eup %1447  ;;  %1236 = vst.msk [vmem:[%s2037_s23 + $0xe0] sm:$0xff] %vm1207_vm0, %v1185_v31  ;;  %v1164_v24 = vsel %vm1162_vm11, %v1163_v63, %v1161_v56  ;;  %v1194_v21 = vmul.f32 %v1446_v30, %v2224_v23 }
 0x1e7   : > { %1233 = vst.msk [vmem:[%s2037_s23 + $0xc8] sm:$0xff] %vm1207_vm0, %v1164_v24  ;;  %v1173_v44 = vmul.f32 %v1448_v40, %v2226_v61 }
 0x1e8   : > { %v1196_v43 = vsel %vm1195_vm12, %v2224_v23, %v1194_v21 }
 0x1e9   : > { %v1450_v37 = vpop.eup %1449  ;;  %v1199_v26 = vsel %vm1197_vm13, %v1198_v36, %v1196_v43  ;;  %v1175_v50 = vsel %vm1174_vm14, %v2226_v61, %v1173_v44 }
 0x1ea   : > { %1238 = vst.msk [vmem:[%s2037_s23 + $0xf0] sm:$0xff] %vm1207_vm0, %v1199_v26  ;;  %v1178_v6 = vsel %vm1176_vm15, %v1177_v7, %v1175_v50  ;;  %v1187_v32 = vmul.f32 %v1450_v37, %v2244_v35 }
 0x1eb   : > { %1235 = vst.msk [vmem:[%s2037_s23 + $0xd8] sm:$0xff] %vm1207_vm0, %v1178_v6 }
 0x1ec   : > { %v1189_v58 = vsel %vm1188_vm1, %v2244_v35, %v1187_v32 }
 0x1ed   : > { %v1452_v20 = vpop.eup %1451  ;;  %v1192_v33 = vsel %vm1190_vm2, %v1191_v55, %v1189_v58 }
 0x1ee   : > { %1237 = vst.msk [vmem:[%s2037_s23 + $0xe8] sm:$0xff] %vm1207_vm0, %v1192_v33  ;;  %v1201_v10 = vmul.f32 %v1452_v20, %v982_v34 }
 0x1f0   : > { %v1203_v41 = vsel %vm1202_vm3, %v982_v34, %v1201_v10 }
 0x1f1   : > { %v1206_v29 = vsel %vm1204_vm4, %v1205_v22, %v1203_v41 }
 0x1f2   : > { %1239 = vst.msk [vmem:[%s2037_s23 + $0xf8] sm:$0xff] %vm1207_vm0, %v1206_v29 }
 0x1f3 PF: > { %s12_s11 = sadd.s32 1, %s1475_s11   ;;  %s2327_s9 = smov %s1471_s10 }
 0x1f4   : > { %p9_p5 = scmp.ge.s32.totalorder %s12_s11, 4   ;;  %s2328_s10 = smov %s2330_s12 }
 0x1f6   :  { %11 = sbr.rel (!%p9_p5) target bundleno = 2 (0x2), region = 61 }

</bundles_post_ra>
